<compile_context>
chip_gen: v7x
topology: tpu7x:2x2x1
jax: 0.10.0
libtpu: 0.0.40
codegen_flags: <defaults>
</compile_context>

<pallas_src>
import functools

import jax
import jax.numpy as jnp
from jax import lax
from jax.experimental import pallas as pl
from jax.experimental.pallas import tpu as pltpu


def _round_up(x: int, m: int) -> int:
    return pl.cdiv(x, m) * m


def _matmul_bt_at_kernel(a_ref, b_ref, o_ref, acc_ref):
    """One (i, j, k) grid step of O = (B @ A).T.

    a_ref:   (tk, tm) tile of A   (A is (K, M))
    b_ref:   (tn, tk) tile of B   (B is (N, K))
    o_ref:   (tm, tn) tile of O   (O is (M, N)), resident across the k axis
    acc_ref: (tn, tm) f32 VMEM accumulator (transposed orientation)
    """
    k = pl.program_id(2)

    @pl.when(k == 0)
    def _init():
        acc_ref[...] = jnp.zeros_like(acc_ref)

    # MXU-natural form: contract b's last dim with a's first dim -> (tn, tm).
    # No per-step operand transposes are needed for this contraction.
    acc_ref[...] += jnp.dot(
        b_ref[...], a_ref[...], preferred_element_type=jnp.float32
    )

    @pl.when(k == pl.num_programs(2) - 1)
    def _finalize():
        # Single transpose per output tile (XLU), amortized over all K steps.
        o_ref[...] = acc_ref[...].T.astype(o_ref.dtype)


def matmul_transposed(A: jax.Array, B: jax.Array, *, tm: int = 512, tn: int = 512,
                      tk: int = 1024) -> jax.Array:
    """Returns (B @ A).T == A.T @ B.T.

    A: (K, M), B: (N, K)  ->  (M, N).
    Handles arbitrary M, N, K by zero-padding up to tile multiples.
    """
    K, M = A.shape
    N, Kb = B.shape
    assert K == Kb, f"inner dims must match: {K} vs {Kb}"

    out_dtype = jnp.promote_types(A.dtype, B.dtype)
    A = A.astype(out_dtype)
    B = B.astype(out_dtype)

    # Keep every tile dimension a multiple of 128 so all block shapes satisfy the
    # (8, 128) layout rule on both the sublane and lane axes.
    tm = min(tm, _round_up(M, 128))
    tn = min(tn, _round_up(N, 128))
    tk = min(tk, _round_up(K, 128))

    Mp = _round_up(M, tm)
    Np = _round_up(N, tn)
    Kp = _round_up(K, tk)

    if (Kp, Mp) != (K, M):
        A = jnp.pad(A, ((0, Kp - K), (0, Mp - M)))
    if (Np, Kp) != (N, K):
        B = jnp.pad(B, ((0, Np - N), (0, Kp - K)))

    grid = (Mp // tm, Np // tn, Kp // tk)

    itemsize = jnp.dtype(out_dtype).itemsize
    cost = pl.CostEstimate(
        flops=2 * Mp * Np * Kp,
        transcendentals=0,
        bytes_accessed=(Kp * Mp + Np * Kp + Mp * Np) * itemsize,
    )

    out_padded = pl.pallas_call(
        _matmul_bt_at_kernel,
        out_shape=jax.ShapeDtypeStruct((Mp, Np), out_dtype),
        grid_spec=pltpu.PrefetchScalarGridSpec(
            num_scalar_prefetch=0,
            grid=grid,
            in_specs=[
                # A tile: rows = K block, cols = M block.
                pl.BlockSpec((tk, tm), lambda i, j, k: (k, i)),
                # B tile: rows = N block, cols = K block.
                pl.BlockSpec((tn, tk), lambda i, j, k: (j, k)),
            ],
            # Output block index is k-invariant -> VMEM-resident across the reduction.
            out_specs=pl.BlockSpec((tm, tn), lambda i, j, k: (i, j)),
            # Accumulator lives in the transposed (tn, tm) orientation.
            scratch_shapes=[pltpu.VMEM((tn, tm), jnp.float32)],
        ),
        compiler_params=pltpu.CompilerParams(
            dimension_semantics=("parallel", "parallel", "arbitrary"),
            # ~11 MiB actual footprint at 512/512/1024 f32; leave headroom but stay
            # safely under v7x's 64 MiB physical per-TensorCore VMEM.
            vmem_limit_bytes=48 * 1024 * 1024,
        ),
        cost_estimate=cost,
    )(A, B)

    if (Mp, Np) != (M, N):
        out_padded = out_padded[:M, :N]
    return out_padded


if __name__ == "__main__":
    key = jax.random.PRNGKey(0)
    kA, kB = jax.random.split(key)

    # Case 1: ragged shapes (exercises the padding path).  A: (K, M), B: (N, K).
    K, M, N = 256, 192, 320
    A = jax.random.normal(kA, (K, M), dtype=jnp.float32)
    B = jax.random.normal(kB, (N, K), dtype=jnp.float32)

    out = jax.block_until_ready(matmul_transposed(A, B))
    ref = jnp.matmul(B, A, precision=lax.Precision.HIGHEST).T
    assert out.shape == (M, N), out.shape
    assert jnp.allclose(out, ref, atol=1e-3, rtol=1e-3), "mismatch vs reference (ragged)"

    # Case 2: even shapes (no padding path).
    K2, M2, N2 = 128, 128, 256
    A2 = jax.random.normal(kA, (K2, M2), dtype=jnp.float32)
    B2 = jax.random.normal(kB, (N2, K2), dtype=jnp.float32)

    out2 = jax.block_until_ready(matmul_transposed(A2, B2))
    ref2 = jnp.matmul(B2, A2, precision=lax.Precision.HIGHEST).T
    assert out2.shape == (M2, N2), out2.shape
    assert jnp.allclose(out2, ref2, atol=1e-3, rtol=1e-3), "mismatch vs reference (even)"

    print("KERNEL_OK")
</pallas_src>

<mosaic_0001>
module attributes {stable_mosaic.version = 11 : i64} {
  func.func @_matmul_bt_at_kernel(%arg0: i32, %arg1: i32, %arg2: i32, %arg3: memref<256x256xf32, #tpu.memory_space<vmem>>, %arg4: memref<384x256xf32, #tpu.memory_space<vmem>>, %arg5: memref<256x384xf32, #tpu.memory_space<vmem>>, %arg6: memref<384x256xf32, #tpu.memory_space<vmem>>) attributes {dimension_semantics = [#tpu.dimension_semantics<parallel>, #tpu.dimension_semantics<parallel>, #tpu.dimension_semantics<arbitrary>], iteration_bounds = array<i64: 1, 1, 1>, scalar_prefetch = 0 : i64, scratch_operands = 1 : i64, tpu.core_type = #tpu.core_type<tc>, window_params = [{transform_indices = @transform_0, window_bounds = array<i64: 256, 256>}, {transform_indices = @transform_1, window_bounds = array<i64: 384, 256>}, {transform_indices = @transform_2, window_bounds = array<i64: 256, 384>}]} {
    %c0_i32 = arith.constant 0 : i32
    %0 = arith.cmpi eq, %arg2, %c0_i32 : i32
    %1 = arith.extui %0 : i1 to i32
    %c0_i32_0 = arith.constant 0 : i32
    %2 = arith.cmpi ne, %1, %c0_i32_0 : i32
    scf.if %2 {
      %cst_10 = arith.constant 0.000000e+00 : f32
      %12 = vector.broadcast %cst_10 : f32 to vector<384x256xf32>
      %c0_11 = arith.constant 0 : index
      %c0_12 = arith.constant 0 : index
      %13 = vector.load %arg6[%c0_11, %c0_12] : memref<384x256xf32, #tpu.memory_space<vmem>>, vector<384x256xf32>
      tpu.vector_store %arg6[%c0_11, %c0_12], %12 {strides = array<i32>} : memref<384x256xf32, #tpu.memory_space<vmem>>, vector<384x256xf32>,
    } else {
    }
    %c0 = arith.constant 0 : index
    %c0_1 = arith.constant 0 : index
    %3 = vector.load %arg6[%c0, %c0_1] : memref<384x256xf32, #tpu.memory_space<vmem>>, vector<384x256xf32>
    %c0_2 = arith.constant 0 : index
    %c0_3 = arith.constant 0 : index
    %4 = vector.load %arg4[%c0_2, %c0_3] : memref<384x256xf32, #tpu.memory_space<vmem>>, vector<384x256xf32>
    %c0_4 = arith.constant 0 : index
    %c0_5 = arith.constant 0 : index
    %5 = vector.load %arg3[%c0_4, %c0_5] : memref<256x256xf32, #tpu.memory_space<vmem>>, vector<256x256xf32>
    %cst = arith.constant dense<0.000000e+00> : vector<384x256xf32>
    %6 = tpu.matmul %4, %5, %cst {dimension_numbers = #tpu.dot_dimension_numbers<[1], [0], [0], [1], [0, 0, 1, 1], [], []>} : vector<384x256xf32>, vector<256x256xf32>, vector<384x256xf32> -> vector<384x256xf32>
    %7 = arith.addf %3, %6 : vector<384x256xf32>
    %c0_6 = arith.constant 0 : index
    %c0_7 = arith.constant 0 : index
    %8 = vector.load %arg6[%c0_6, %c0_7] : memref<384x256xf32, #tpu.memory_space<vmem>>, vector<384x256xf32>
    tpu.vector_store %arg6[%c0_6, %c0_7], %7 {strides = array<i32>} : memref<384x256xf32, #tpu.memory_space<vmem>>, vector<384x256xf32>,
    %c0_i32_8 = arith.constant 0 : i32
    %9 = arith.cmpi eq, %arg2, %c0_i32_8 : i32
    %10 = arith.extui %9 : i1 to i32
    %c0_i32_9 = arith.constant 0 : i32
    %11 = arith.cmpi ne, %10, %c0_i32_9 : i32
    scf.if %11 {
      %c0_10 = arith.constant 0 : index
      %c0_11 = arith.constant 0 : index
      %12 = vector.load %arg6[%c0_10, %c0_11] : memref<384x256xf32, #tpu.memory_space<vmem>>, vector<384x256xf32>
      %13 = tpu.transpose %12, [1, 0] : vector<384x256xf32> -> vector<256x384xf32>
      %c0_12 = arith.constant 0 : index
      %c0_13 = arith.constant 0 : index
      %14 = vector.load %arg5[%c0_12, %c0_13] : memref<256x384xf32, #tpu.memory_space<vmem>>, vector<256x384xf32>
      tpu.vector_store %arg5[%c0_12, %c0_13], %13 {strides = array<i32>} : memref<256x384xf32, #tpu.memory_space<vmem>>, vector<256x384xf32>,
    } else {
    }
    return
  }
  func.func @transform_0(%arg0: i32, %arg1: i32, %arg2: i32) -> (i32, i32) {
    %c0_i32 = arith.constant 0 : i32
    return %arg2, %arg0 : i32, i32
  }
  func.func @transform_1(%arg0: i32, %arg1: i32, %arg2: i32) -> (i32, i32) {
    %c0_i32 = arith.constant 0 : i32
    return %arg1, %arg2 : i32, i32
  }
  func.func @transform_2(%arg0: i32, %arg1: i32, %arg2: i32) -> (i32, i32) {
    %c0_i32 = arith.constant 0 : i32
    return %arg0, %arg1 : i32, i32
  }
}

</mosaic_0001>

<bundles_post_ra>
// kernel: tpu_custom_call.1
= control target key start
LH: loop header
LB: loop body
LE: loop exit
PB: predicated region body
PF: predicated region fallthrough
CT: control target
= control target key end

     0   :  { %7 = vsyncpa [#allocation4], 0  ;;  %s1723_s0 = inlined_call_operand.hbm [shape: f32[256,256], index: 0, kind: input, shape index: {}]   ;;  %s1724_s1 = inlined_call_operand.hbm [shape: f32[384,256], index: 1, kind: input, shape index: {}]   ;;  %s1725_s2 = inlined_call_operand.hbm [shape: f32[256,384], index: 2, kind: output, shape index: {}]  }
   0x1   :  { %8 = vsyncpa [#allocation7], 0 }
   0x2   :  { %9 = vsyncpa [#allocation5], 0  ;;  %s1521_s9 = smov [#allocation3]   ;;  %s1449_s13 = scalar_lea.hbm %s1723_s0, 8192 }
   0x3   :  { %s15_s10 = sshll.u32 %s1521_s9, 4  ;;  %p1450_p0 = scmp.ne.s32.totalorder %s1723_s0, %s1449_s13  ;;  %s16_s10 = int_to_ptr.vmem [resolvable:$true] %s15_s10 }
   0x4   :  { %p1453_p1 = scmp.lt.u32.totalorder %s1449_s13, %s1723_s0 }
   0x6   :  { %p1455_p2 = pnand %p1453_p1, %p1450_p0 }
   0x8   :  { %1458 = shalt.err (!%p1455_p2)
}
   0x9   :  { %s1459_s18 = scalar_lea.vmem %s16_s10, 8192  ;;  %p1464_p4 = scmp.lt.s32.totalorder %s16_s10, %s16_s10 }
   0xa   :  { %p1460_p3 = scmp.ne.s32.totalorder %s16_s10, %s1459_s18  ;;  %p1465_p5 = scmp.lt.s32.totalorder %s1459_s18, %s1459_s18 }
   0xc   :  { %p1466_p6 = por %p1465_p5, %p1464_p4 }
   0xe   :  { %p1467_p7 = pnand %p1466_p6, %p1460_p3 }
  0x10   :  { %1470 = shalt.err (!%p1467_p7)
}
  0x11   :  { %s1522_s19 = smov 256   ;;  %s1523_s20 = smov 16  }
  0x12   :  { %21 = dma.hbm_to_vmem [thread:$0]  %s1723_s0, 8192, %s16_s10, [#allocation4], %s1522_s19, %s1522_s19, %s1523_s20  }
  0x13   :  { %s1524_s23 = smov [#allocation6]   ;;  %s1471_s27 = scalar_lea.hbm %s1724_s1, 12288 }
  0x14   :  { %s27_s24 = sshll.u32 %s1524_s23, 4  ;;  %p1472_p8 = scmp.ne.s32.totalorder %s1724_s1, %s1471_s27  ;;  %s28_s24 = int_to_ptr.vmem [resolvable:$true] %s27_s24 }
  0x15   :  { %p1475_p9 = scmp.lt.u32.totalorder %s1471_s27, %s1724_s1 }
  0x17   :  { %p1477_p10 = pnand %p1475_p9, %p1472_p8 }
  0x19   :  { %1480 = shalt.err (!%p1477_p10)
}
  0x1a   :  { %s1481_s4 = scalar_lea.vmem %s28_s24, 12288  ;;  %p1486_p12 = scmp.lt.s32.totalorder %s28_s24, %s28_s24 }
  0x1b   :  { %p1482_p11 = scmp.ne.s32.totalorder %s28_s24, %s1481_s4  ;;  %p1487_p13 = scmp.lt.s32.totalorder %s1481_s4, %s1481_s4 }
  0x1d   :  { %p1488_p0 = por %p1487_p13, %p1486_p12 }
  0x1f   :  { %p1489_p1 = pnand %p1488_p0, %p1482_p11 }
  0x21   :  { %1492 = shalt.err (!%p1489_p1)
}
  0x22   :  { %33 = dma.hbm_to_vmem [thread:$0]  %s1724_s1, 12288, %s28_s24, [#allocation7], %s1522_s19, %s1522_s19, %s1523_s20  }
  0x23   :  { %1515 = dma.done.wait [#allocation4], 8192  }
  0x24   :  { %1516 = vsyncadd [#allocation4], 4294959104 }
  0x25   :  { %1517 = dma.done.wait [#allocation7], 12288  }
  0x26   :  { %1518 = vsyncadd [#allocation7], 4294955008  ;;  %v333_v0 = vld [vmem:[#allocation3 + $0x8] sm:$0xff]  ;;  %v335_v1 = vld [vmem:[#allocation3 + $0x18] sm:$0xff]  ;;  %s1525_s1 = smov [#allocation8]  }
  0x27   :  { %v332_v2 = vld [vmem:[#allocation3] sm:$0xff]  ;;  %v1346_v3 = vpack.c.bf16 %v335_v1, %v333_v0  ;;  %v334_v4 = vld [vmem:[#allocation3 + $0x10] sm:$0xff]  ;;  %v337_v5 = vld [vmem:[#allocation3 + $0x28] sm:$0xff]  ;;  %s1333_s6 = sshll.u32 %s1525_s1, 4  ;;  %s1334_s6 = int_to_ptr.vmem [resolvable:$true] %s1333_s6 }
  0x28   :  { %v339_v6 = vld [vmem:[#allocation3 + $0x38] sm:$0xff]  ;;  %v1348_v7 = vpack.c.bf16 %v334_v4, %v332_v2  ;;  %v336_v9 = vld [vmem:[#allocation3 + $0x20] sm:$0xff]  ;;  %v338_v10 = vld [vmem:[#allocation3 + $0x30] sm:$0xff]  ;;  %s1493_s7 = scalar_lea.vmem %s1334_s6, 12288  ;;  %p1498_p3 = scmp.lt.s32.totalorder %s1334_s6, %s1334_s6 }
  0x29   :  { %v1350_v8 = vpack.c.bf16 %v339_v6, %v337_v5  ;;  %v341_v11 = vld [vmem:[#allocation3 + $0x48] sm:$0xff]  ;;  %1347 = vmatprep.subr.bf16.mxu0 %v1346_v3  ;;  %v343_v12 = vld [vmem:[#allocation3 + $0x58] sm:$0xff]  ;;  %1410 = vmatprep.subr.bf16.mxu1 %v1346_v3  ;;  %v1352_v13 = vpack.c.bf16 %v338_v10, %v336_v9  ;;  %v340_v15 = vld [vmem:[#allocation3 + $0x40] sm:$0xff]  ;;  %p1494_p2 = scmp.ne.s32.totalorder %s1334_s6, %s1493_s7  ;;  %p1499_p4 = scmp.lt.s32.totalorder %s1493_s7, %s1493_s7 }
  0x2a   :  { %1349 = vmatpush1.bf16.msra.mxu0 %v1348_v7  ;;  %1426 = vmatpush1.bf16.msra.mxu1 %v1348_v7  ;;  %v1354_v14 = vpack.c.bf16 %v343_v12, %v341_v11  ;;  %v342_v16 = vld [vmem:[#allocation3 + $0x50] sm:$0xff]  ;;  %v345_v17 = vld [vmem:[#allocation3 + $0x68] sm:$0xff]  ;;  %v347_v18 = vld [vmem:[#allocation3 + $0x78] sm:$0xff] }
  0x2b   :  { %1351 = vmatprep.subr.bf16.mxu0 %v1350_v8  ;;  %1411 = vmatprep.subr.bf16.mxu1 %v1350_v8  ;;  %v1356_v19 = vpack.c.bf16 %v342_v16, %v340_v15  ;;  %v1358_v20 = vpack.c.bf16 %v347_v18, %v345_v17  ;;  %v344_v21 = vld [vmem:[#allocation3 + $0x60] sm:$0xff]  ;;  %v346_v22 = vld [vmem:[#allocation3 + $0x70] sm:$0xff]  ;;  %v349_v23 = vld [vmem:[#allocation3 + $0x88] sm:$0xff]  ;;  %p1500_p5 = por %p1499_p4, %p1498_p3 }
  0x2c   :  { %v351_v24 = vld [vmem:[#allocation3 + $0x98] sm:$0xff]  ;;  %v1360_v25 = vpack.c.bf16 %v346_v22, %v344_v21  ;;  %v348_v27 = vld [vmem:[#allocation3 + $0x80] sm:$0xff]  ;;  %v350_v28 = vld [vmem:[#allocation3 + $0x90] sm:$0xff] }
  0x2d   :  { %v1362_v26 = vpack.c.bf16 %v351_v24, %v349_v23  ;;  %v353_v29 = vld [vmem:[#allocation3 + $0xa8] sm:$0xff]  ;;  %v355_v30 = vld [vmem:[#allocation3 + $0xb8] sm:$0xff]  ;;  %v1364_v31 = vpack.c.bf16 %v350_v28, %v348_v27  ;;  %v352_v33 = vld [vmem:[#allocation3 + $0xa0] sm:$0xff]  ;;  %p1501_p6 = pnand %p1500_p5, %p1494_p2 }
  0x2e   :  { %1353 = vmatpush1.bf16.msra.mxu0 %v1352_v13  ;;  %1427 = vmatpush1.bf16.msra.mxu1 %v1352_v13  ;;  %v1366_v32 = vpack.c.bf16 %v355_v30, %v353_v29  ;;  %v354_v34 = vld [vmem:[#allocation3 + $0xb0] sm:$0xff]  ;;  %v357_v35 = vld [vmem:[#allocation3 + $0xc8] sm:$0xff]  ;;  %v359_v36 = vld [vmem:[#allocation3 + $0xd8] sm:$0xff] }
  0x2f   :  { %1355 = vmatprep.subr.bf16.mxu0 %v1354_v14  ;;  %1412 = vmatprep.subr.bf16.mxu1 %v1354_v14  ;;  %v1368_v37 = vpack.c.bf16 %v354_v34, %v352_v33  ;;  %v1370_v38 = vpack.c.bf16 %v359_v36, %v357_v35  ;;  %v356_v39 = vld [vmem:[#allocation3 + $0xc0] sm:$0xff]  ;;  %v358_v40 = vld [vmem:[#allocation3 + $0xd0] sm:$0xff]  ;;  %v237_v41 = vld [vmem:[#allocation6 + $0x8] sm:$0xff] }
  0x30   :  { %v361_v42 = vld [vmem:[#allocation3 + $0xe8] sm:$0xff]  ;;  %v363_v43 = vld [vmem:[#allocation3 + $0xf8] sm:$0xff]  ;;  %460 = vmatprep.mubr.f32.mxu0 %v237_v41  ;;  %v1372_v44 = vpack.c.bf16 %v358_v40, %v356_v39  ;;  %v360_v46 = vld [vmem:[#allocation3 + $0xe0] sm:$0xff] }
  0x31   :  { %v1374_v45 = vpack.c.bf16 %v363_v43, %v361_v42  ;;  %v362_v47 = vld [vmem:[#allocation3 + $0xf0] sm:$0xff]  ;;  %v365_v48 = vld [vmem:[#allocation3 + $0x108] sm:$0xff]  ;;  %v367_v49 = vld [vmem:[#allocation3 + $0x118] sm:$0xff] }
  0x32   :  { %1357 = vmatpush1.bf16.msra.mxu0 %v1356_v19  ;;  %1428 = vmatpush1.bf16.msra.mxu1 %v1356_v19  ;;  %v1376_v50 = vpack.c.bf16 %v362_v47, %v360_v46  ;;  %v1378_v51 = vpack.c.bf16 %v367_v49, %v365_v48  ;;  %v364_v52 = vld [vmem:[#allocation3 + $0x100] sm:$0xff]  ;;  %v366_v53 = vld [vmem:[#allocation3 + $0x110] sm:$0xff]  ;;  %v369_v54 = vld [vmem:[#allocation3 + $0x128] sm:$0xff] }
  0x33   :  { %1359 = vmatprep.subr.bf16.mxu0 %v1358_v20  ;;  %1413 = vmatprep.subr.bf16.mxu1 %v1358_v20  ;;  %v371_v55 = vld [vmem:[#allocation3 + $0x138] sm:$0xff]  ;;  %v1380_v56 = vpack.c.bf16 %v366_v53, %v364_v52  ;;  %v368_v58 = vld [vmem:[#allocation3 + $0x120] sm:$0xff]  ;;  %v370_v59 = vld [vmem:[#allocation3 + $0x130] sm:$0xff] }
  0x34   :  { %v1382_v57 = vpack.c.bf16 %v371_v55, %v369_v54  ;;  %v373_v60 = vld [vmem:[#allocation3 + $0x148] sm:$0xff]  ;;  %v375_v61 = vld [vmem:[#allocation3 + $0x158] sm:$0xff]  ;;  %v1384_v62 = vpack.c.bf16 %v370_v59, %v368_v58  ;;  %v372_v0 = vld [vmem:[#allocation3 + $0x140] sm:$0xff] }
  0x35   :  { %v1386_v63 = vpack.c.bf16 %v375_v61, %v373_v60  ;;  %v374_v1 = vld [vmem:[#allocation3 + $0x150] sm:$0xff]  ;;  %v285_v2 = vld [vmem:[#allocation6 + $0x188] sm:$0xff]  ;;  %v379_v4 = vld [vmem:[#allocation3 + $0x178] sm:$0xff] }
  0x36   :  { %1361 = vmatpush1.bf16.msra.mxu0 %v1360_v25  ;;  %1429 = vmatpush1.bf16.msra.mxu1 %v1360_v25  ;;  %v377_v3 = vld [vmem:[#allocation3 + $0x168] sm:$0xff]  ;;  %v1388_v5 = vpack.c.bf16 %v374_v1, %v372_v0  ;;  %v376_v7 = vld [vmem:[#allocation3 + $0x160] sm:$0xff]  ;;  %v378_v8 = vld [vmem:[#allocation3 + $0x170] sm:$0xff] }
  0x37   :  { %1363 = vmatprep.subr.bf16.mxu0 %v1362_v26  ;;  %1414 = vmatprep.subr.bf16.mxu1 %v1362_v26  ;;  %v1390_v6 = vpack.c.bf16 %v379_v4, %v377_v3  ;;  %v381_v9 = vld [vmem:[#allocation3 + $0x188] sm:$0xff]  ;;  %v383_v10 = vld [vmem:[#allocation3 + $0x198] sm:$0xff]  ;;  %v1392_v11 = vpack.c.bf16 %v378_v8, %v376_v7  ;;  %v380_v13 = vld [vmem:[#allocation3 + $0x180] sm:$0xff] }
  0x38   :  { %604 = vmatprep.mubr.f32.mxu1 %v285_v2  ;;  %v1394_v12 = vpack.c.bf16 %v383_v10, %v381_v9  ;;  %v382_v14 = vld [vmem:[#allocation3 + $0x190] sm:$0xff]  ;;  %v385_v15 = vld [vmem:[#allocation3 + $0x1a8] sm:$0xff]  ;;  %v387_v16 = vld [vmem:[#allocation3 + $0x1b8] sm:$0xff] }
  0x39   :  { %v1396_v17 = vpack.c.bf16 %v382_v14, %v380_v13  ;;  %v1398_v18 = vpack.c.bf16 %v387_v16, %v385_v15  ;;  %v384_v19 = vld [vmem:[#allocation3 + $0x1a0] sm:$0xff]  ;;  %v386_v20 = vld [vmem:[#allocation3 + $0x1b0] sm:$0xff]  ;;  %v389_v21 = vld [vmem:[#allocation3 + $0x1c8] sm:$0xff] }
  0x3a   :  { %1365 = vmatpush1.bf16.msra.mxu0 %v1364_v31  ;;  %1430 = vmatpush1.bf16.msra.mxu1 %v1364_v31  ;;  %v391_v22 = vld [vmem:[#allocation3 + $0x1d8] sm:$0xff]  ;;  %v1400_v23 = vpack.c.bf16 %v386_v20, %v384_v19  ;;  %v388_v25 = vld [vmem:[#allocation3 + $0x1c0] sm:$0xff]  ;;  %v390_v26 = vld [vmem:[#allocation3 + $0x1d0] sm:$0xff] }
  0x3b   :  { %1367 = vmatprep.subr.bf16.mxu0 %v1366_v32  ;;  %1415 = vmatprep.subr.bf16.mxu1 %v1366_v32  ;;  %v1402_v24 = vpack.c.bf16 %v391_v22, %v389_v21  ;;  %v393_v27 = vld [vmem:[#allocation3 + $0x1e8] sm:$0xff]  ;;  %v395_v28 = vld [vmem:[#allocation3 + $0x1f8] sm:$0xff]  ;;  %v1404_v29 = vpack.c.bf16 %v390_v26, %v388_v25  ;;  %v392_v31 = vld [vmem:[#allocation3 + $0x1e0] sm:$0xff] }
  0x3c   :  { %v1406_v30 = vpack.c.bf16 %v395_v28, %v393_v27  ;;  %v394_v32 = vld [vmem:[#allocation3 + $0x1f0] sm:$0xff]  ;;  %v236_v34 = vld [vmem:[#allocation6] sm:$0xff]  ;;  %v239_v36 = vld [vmem:[#allocation6 + $0x18] sm:$0xff] }
  0x3d   :  { %v1408_v33 = vpack.c.bf16 %v394_v32, %v392_v31  ;;  %v284_v35 = vld [vmem:[#allocation6 + $0x180] sm:$0xff]  ;;  %v286_v39 = vld [vmem:[#allocation6 + $0x190] sm:$0xff]  ;;  %v241_v40 = vld [vmem:[#allocation6 + $0x28] sm:$0xff] }
  0x3e   :  { %1369 = vmatpush1.bf16.msra.mxu0 %v1368_v37  ;;  %1431 = vmatpush1.bf16.msra.mxu1 %v1368_v37  ;;  %v287_v37 = vld [vmem:[#allocation6 + $0x198] sm:$0xff]  ;;  %v289_v41 = vld [vmem:[#allocation6 + $0x1a8] sm:$0xff]  ;;  %v240_v42 = vld [vmem:[#allocation6 + $0x20] sm:$0xff] }
  0x3f   :  { %1371 = vmatprep.subr.bf16.mxu0 %v1370_v38  ;;  %1416 = vmatprep.subr.bf16.mxu1 %v1370_v38  ;;  %v238_v38 = vld [vmem:[#allocation6 + $0x10] sm:$0xff]  ;;  %v288_v43 = vld [vmem:[#allocation6 + $0x1a0] sm:$0xff]  ;;  %v245_v48 = vld [vmem:[#allocation6 + $0x48] sm:$0xff] }
  0x40   :  { %v242_v46 = vld [vmem:[#allocation6 + $0x30] sm:$0xff]  ;;  %v293_v49 = vld [vmem:[#allocation6 + $0x1c8] sm:$0xff]  ;;  %v247_v52 = vld [vmem:[#allocation6 + $0x58] sm:$0xff] }
  0x41   :  { %v290_v47 = vld [vmem:[#allocation6 + $0x1b0] sm:$0xff]  ;;  %v295_v53 = vld [vmem:[#allocation6 + $0x1d8] sm:$0xff]  ;;  %v248_v58 = vld [vmem:[#allocation6 + $0x60] sm:$0xff] }
  0x42   :  { %1373 = vmatpush1.bf16.msra.mxu0 %v1372_v44  ;;  %1432 = vmatpush1.bf16.msra.mxu1 %v1372_v44  ;;  %v243_v44 = vld [vmem:[#allocation6 + $0x38] sm:$0xff]  ;;  %v246_v54 = vld [vmem:[#allocation6 + $0x50] sm:$0xff]  ;;  %v296_v59 = vld [vmem:[#allocation6 + $0x1e0] sm:$0xff] }
  0x43   :  { %1375 = vmatprep.subr.bf16.mxu0 %v1374_v45  ;;  %1417 = vmatprep.subr.bf16.mxu1 %v1374_v45  ;;  %v291_v45 = vld [vmem:[#allocation6 + $0x1b8] sm:$0xff]  ;;  %v294_v55 = vld [vmem:[#allocation6 + $0x1d0] sm:$0xff]  ;;  %v253_v0 = vld [vmem:[#allocation6 + $0x88] sm:$0xff] }
  0x44   :  { %v251_v60 = vld [vmem:[#allocation6 + $0x78] sm:$0xff]  ;;  %v301_v1 = vld [vmem:[#allocation6 + $0x208] sm:$0xff]  ;;  %v252_v2 = vld [vmem:[#allocation6 + $0x80] sm:$0xff] }
  0x45   :  { %v299_v61 = vld [vmem:[#allocation6 + $0x1f8] sm:$0xff]  ;;  %v300_v3 = vld [vmem:[#allocation6 + $0x200] sm:$0xff]  ;;  %v302_v7 = vld [vmem:[#allocation6 + $0x210] sm:$0xff] }
  0x46   :  { %1377 = vmatpush1.bf16.msra.mxu0 %v1376_v50  ;;  %1433 = vmatpush1.bf16.msra.mxu1 %v1376_v50  ;;  %v244_v50 = vld [vmem:[#allocation6 + $0x40] sm:$0xff]  ;;  %v255_v4 = vld [vmem:[#allocation6 + $0x98] sm:$0xff]  ;;  %v257_v8 = vld [vmem:[#allocation6 + $0xa8] sm:$0xff] }
  0x47   :  { %1379 = vmatprep.subr.bf16.mxu0 %v1378_v51  ;;  %1418 = vmatprep.subr.bf16.mxu1 %v1378_v51  ;;  %v292_v51 = vld [vmem:[#allocation6 + $0x1c0] sm:$0xff]  ;;  %v305_v9 = vld [vmem:[#allocation6 + $0x228] sm:$0xff]  ;;  %v307_v13 = vld [vmem:[#allocation6 + $0x238] sm:$0xff] }
  0x48   :  { %v256_v10 = vld [vmem:[#allocation6 + $0xa0] sm:$0xff]  ;;  %v258_v14 = vld [vmem:[#allocation6 + $0xb0] sm:$0xff]  ;;  %v261_v16 = vld [vmem:[#allocation6 + $0xc8] sm:$0xff] }
  0x49   :  { %v306_v15 = vld [vmem:[#allocation6 + $0x230] sm:$0xff]  ;;  %v308_v19 = vld [vmem:[#allocation6 + $0x240] sm:$0xff]  ;;  %v263_v20 = vld [vmem:[#allocation6 + $0xd8] sm:$0xff] }
  0x4a   :  { %1381 = vmatpush1.bf16.msra.mxu0 %v1380_v56  ;;  %1434 = vmatpush1.bf16.msra.mxu1 %v1380_v56  ;;  %v249_v56 = vld [vmem:[#allocation6 + $0x68] sm:$0xff]  ;;  %v311_v21 = vld [vmem:[#allocation6 + $0x258] sm:$0xff]  ;;  %v262_v22 = vld [vmem:[#allocation6 + $0xd0] sm:$0xff] }
  0x4b   :  { %1383 = vmatprep.subr.bf16.mxu0 %v1382_v57  ;;  %1419 = vmatprep.subr.bf16.mxu1 %v1382_v57  ;;  %v297_v57 = vld [vmem:[#allocation6 + $0x1e8] sm:$0xff]  ;;  %v264_v26 = vld [vmem:[#allocation6 + $0xe0] sm:$0xff]  ;;  %v267_v28 = vld [vmem:[#allocation6 + $0xf8] sm:$0xff] }
  0x4c   :  { %v313_v25 = vld [vmem:[#allocation6 + $0x268] sm:$0xff]  ;;  %v312_v27 = vld [vmem:[#allocation6 + $0x260] sm:$0xff]  ;;  %v314_v31 = vld [vmem:[#allocation6 + $0x270] sm:$0xff] }
  0x4d   :  { %v269_v32 = vld [vmem:[#allocation6 + $0x108] sm:$0xff] }
  0x4e   :  { %1385 = vmatpush1.bf16.msra.mxu0 %v1384_v62  ;;  %1435 = vmatpush1.bf16.msra.mxu1 %v1384_v62  ;;  %v250_v62 = vld [vmem:[#allocation6 + $0x70] sm:$0xff] }
  0x4f   :  { %1387 = vmatprep.subr.bf16.mxu0 %v1386_v63  ;;  %1420 = vmatprep.subr.bf16.mxu1 %v1386_v63  ;;  %v298_v63 = vld [vmem:[#allocation6 + $0x1f0] sm:$0xff] }
  0x52   :  { %1389 = vmatpush1.bf16.msra.mxu0 %v1388_v5  ;;  %1436 = vmatpush1.bf16.msra.mxu1 %v1388_v5  ;;  %v303_v5 = vld [vmem:[#allocation6 + $0x218] sm:$0xff] }
  0x53   :  { %1391 = vmatprep.subr.bf16.mxu0 %v1390_v6  ;;  %1421 = vmatprep.subr.bf16.mxu1 %v1390_v6  ;;  %v254_v6 = vld [vmem:[#allocation6 + $0x90] sm:$0xff] }
  0x56   :  { %1393 = vmatpush1.bf16.msra.mxu0 %v1392_v11  ;;  %1437 = vmatpush1.bf16.msra.mxu1 %v1392_v11  ;;  %v304_v11 = vld [vmem:[#allocation6 + $0x220] sm:$0xff] }
  0x57   :  { %1395 = vmatprep.subr.bf16.mxu0 %v1394_v12  ;;  %1422 = vmatprep.subr.bf16.mxu1 %v1394_v12  ;;  %v259_v12 = vld [vmem:[#allocation6 + $0xb8] sm:$0xff] }
  0x5a   :  { %1397 = vmatpush1.bf16.msra.mxu0 %v1396_v17  ;;  %1438 = vmatpush1.bf16.msra.mxu1 %v1396_v17  ;;  %v309_v17 = vld [vmem:[#allocation6 + $0x248] sm:$0xff] }
  0x5b   :  { %1399 = vmatprep.subr.bf16.mxu0 %v1398_v18  ;;  %1423 = vmatprep.subr.bf16.mxu1 %v1398_v18  ;;  %v260_v18 = vld [vmem:[#allocation6 + $0xc0] sm:$0xff] }
  0x5e   :  { %1401 = vmatpush1.bf16.msra.mxu0 %v1400_v23  ;;  %1439 = vmatpush1.bf16.msra.mxu1 %v1400_v23  ;;  %v310_v23 = vld [vmem:[#allocation6 + $0x250] sm:$0xff] }
  0x5f   :  { %1403 = vmatprep.subr.bf16.mxu0 %v1402_v24  ;;  %1424 = vmatprep.subr.bf16.mxu1 %v1402_v24  ;;  %v265_v24 = vld [vmem:[#allocation6 + $0xe8] sm:$0xff] }
  0x62   :  { %1405 = vmatpush1.bf16.msra.mxu0 %v1404_v29  ;;  %1440 = vmatpush1.bf16.msra.mxu1 %v1404_v29  ;;  %v315_v29 = vld [vmem:[#allocation6 + $0x278] sm:$0xff] }
  0x63   :  { %1407 = vmatprep.subr.bf16.mxu0 %v1406_v30  ;;  %1425 = vmatprep.subr.bf16.mxu1 %v1406_v30  ;;  %v266_v30 = vld [vmem:[#allocation6 + $0xf0] sm:$0xff] }
  0x66   :  { %1409 = vmatpush1.bf16.msra.mxu0 %v1408_v33  ;;  %1441 = vmatpush1.bf16.msra.mxu1 %v1408_v33  ;;  %v317_v33 = vld [vmem:[#allocation6 + $0x288] sm:$0xff] }
  0x69   :  { %461 = vmatmul.mubr.f32.vlgmr.msra.gmra.mrb[0].mxu0 %v236_v34  ;;  %605 = vmatmul.mubr.f32.vlgmr.msra.gmra.mrb[0].mxu1 %v284_v35  ;;  %v268_v34 = vld [vmem:[#allocation6 + $0x100] sm:$0xff] }
  0x6a   :  { %466 = vmatprep.mubr.f32.mxu0 %v239_v36  ;;  %610 = vmatprep.mubr.f32.mxu1 %v287_v37  ;;  %v316_v35 = vld [vmem:[#allocation6 + $0x280] sm:$0xff]  ;;  %v271_v36 = vld [vmem:[#allocation6 + $0x118] sm:$0xff] }
  0x6b   :  { %v319_v37 = vld [vmem:[#allocation6 + $0x298] sm:$0xff] }
  0x6d   :  { %467 = vmatmul.mubr.f32.gmra.mrb[2].mxu0 %v238_v38  ;;  %611 = vmatmul.mubr.f32.gmra.mrb[2].mxu1 %v286_v39  ;;  %v270_v38 = vld [vmem:[#allocation6 + $0x110] sm:$0xff] }
  0x6e   :  { %472 = vmatprep.mubr.f32.mxu0 %v241_v40  ;;  %616 = vmatprep.mubr.f32.mxu1 %v289_v41  ;;  %v318_v39 = vld [vmem:[#allocation6 + $0x290] sm:$0xff]  ;;  %v273_v40 = vld [vmem:[#allocation6 + $0x128] sm:$0xff] }
  0x6f   :  { %v321_v41 = vld [vmem:[#allocation6 + $0x2a8] sm:$0xff] }
  0x71   :  { %473 = vmatmul.mubr.f32.gmra.mrb[4].mxu0 %v240_v42  ;;  %617 = vmatmul.mubr.f32.gmra.mrb[4].mxu1 %v288_v43  ;;  %v272_v42 = vld [vmem:[#allocation6 + $0x120] sm:$0xff] }
  0x72   :  { %478 = vmatprep.mubr.f32.mxu0 %v243_v44  ;;  %622 = vmatprep.mubr.f32.mxu1 %v291_v45  ;;  %v320_v43 = vld [vmem:[#allocation6 + $0x2a0] sm:$0xff]  ;;  %v275_v44 = vld [vmem:[#allocation6 + $0x138] sm:$0xff] }
  0x73   :  { %v323_v45 = vld [vmem:[#allocation6 + $0x2b8] sm:$0xff] }
  0x75   :  { %479 = vmatmul.mubr.f32.gmra.mrb[6].mxu0 %v242_v46  ;;  %623 = vmatmul.mubr.f32.gmra.mrb[6].mxu1 %v290_v47  ;;  %v274_v46 = vld [vmem:[#allocation6 + $0x130] sm:$0xff] }
  0x76   :  { %484 = vmatprep.mubr.f32.mxu0 %v245_v48  ;;  %628 = vmatprep.mubr.f32.mxu1 %v293_v49  ;;  %v322_v47 = vld [vmem:[#allocation6 + $0x2b0] sm:$0xff]  ;;  %v277_v48 = vld [vmem:[#allocation6 + $0x148] sm:$0xff] }
  0x77   :  { %v325_v49 = vld [vmem:[#allocation6 + $0x2c8] sm:$0xff] }
  0x79   :  { %485 = vmatmul.mubr.f32.gmra.mrb[8].mxu0 %v244_v50  ;;  %629 = vmatmul.mubr.f32.gmra.mrb[8].mxu1 %v292_v51  ;;  %v276_v50 = vld [vmem:[#allocation6 + $0x140] sm:$0xff] }
  0x7a   :  { %490 = vmatprep.mubr.f32.mxu0 %v247_v52  ;;  %634 = vmatprep.mubr.f32.mxu1 %v295_v53  ;;  %v324_v51 = vld [vmem:[#allocation6 + $0x2c0] sm:$0xff]  ;;  %v279_v52 = vld [vmem:[#allocation6 + $0x158] sm:$0xff] }
  0x7b   :  { %v327_v53 = vld [vmem:[#allocation6 + $0x2d8] sm:$0xff] }
  0x7d   :  { %491 = vmatmul.mubr.f32.gmra.mrb[10].mxu0 %v246_v54  ;;  %635 = vmatmul.mubr.f32.gmra.mrb[10].mxu1 %v294_v55  ;;  %v278_v54 = vld [vmem:[#allocation6 + $0x150] sm:$0xff] }
  0x7e   :  { %496 = vmatprep.mubr.f32.mxu0 %v249_v56  ;;  %640 = vmatprep.mubr.f32.mxu1 %v297_v57  ;;  %v326_v55 = vld [vmem:[#allocation6 + $0x2d0] sm:$0xff]  ;;  %v281_v56 = vld [vmem:[#allocation6 + $0x168] sm:$0xff] }
  0x7f   :  { %v329_v57 = vld [vmem:[#allocation6 + $0x2e8] sm:$0xff] }
  0x81   :  { %497 = vmatmul.mubr.f32.gmra.mrb[12].mxu0 %v248_v58  ;;  %641 = vmatmul.mubr.f32.gmra.mrb[12].mxu1 %v296_v59  ;;  %v280_v58 = vld [vmem:[#allocation6 + $0x160] sm:$0xff] }
  0x82   :  { %502 = vmatprep.mubr.f32.mxu0 %v251_v60  ;;  %646 = vmatprep.mubr.f32.mxu1 %v299_v61  ;;  %v328_v59 = vld [vmem:[#allocation6 + $0x2e0] sm:$0xff]  ;;  %v283_v60 = vld [vmem:[#allocation6 + $0x178] sm:$0xff] }
  0x83   :  { %v331_v61 = vld [vmem:[#allocation6 + $0x2f8] sm:$0xff] }
  0x85   :  { %503 = vmatmul.mubr.f32.gmra.mrb[14].mxu0 %v250_v62  ;;  %647 = vmatmul.mubr.f32.gmra.mrb[14].mxu1 %v298_v63  ;;  %v282_v62 = vld [vmem:[#allocation6 + $0x170] sm:$0xff] }
  0x86   :  { %508 = vmatprep.mubr.f32.mxu0 %v253_v0  ;;  %652 = vmatprep.mubr.f32.mxu1 %v301_v1  ;;  %v330_v63 = vld [vmem:[#allocation6 + $0x2f0] sm:$0xff] }
  0x89   :  { %509 = vmatmul.mubr.f32.gmra.mrb[16].mxu0 %v252_v2  ;;  %653 = vmatmul.mubr.f32.gmra.mrb[16].mxu1 %v300_v3 }
  0x8a   :  { %514 = vmatprep.mubr.f32.mxu0 %v255_v4  ;;  %658 = vmatprep.mubr.f32.mxu1 %v303_v5 }
  0x8d   :  { %515 = vmatmul.mubr.f32.gmra.mrb[18].mxu0 %v254_v6  ;;  %659 = vmatmul.mubr.f32.gmra.mrb[18].mxu1 %v302_v7 }
  0x8e   :  { %520 = vmatprep.mubr.f32.mxu0 %v257_v8  ;;  %664 = vmatprep.mubr.f32.mxu1 %v305_v9 }
  0x91   :  { %521 = vmatmul.mubr.f32.gmra.mrb[20].mxu0 %v256_v10  ;;  %665 = vmatmul.mubr.f32.gmra.mrb[20].mxu1 %v304_v11 }
  0x92   :  { %526 = vmatprep.mubr.f32.mxu0 %v259_v12  ;;  %670 = vmatprep.mubr.f32.mxu1 %v307_v13 }
  0x95   :  { %527 = vmatmul.mubr.f32.gmra.mrb[22].mxu0 %v258_v14  ;;  %671 = vmatmul.mubr.f32.gmra.mrb[22].mxu1 %v306_v15 }
  0x96   :  { %532 = vmatprep.mubr.f32.mxu0 %v261_v16  ;;  %676 = vmatprep.mubr.f32.mxu1 %v309_v17 }
  0x99   :  { %533 = vmatmul.mubr.f32.gmra.mrb[24].mxu0 %v260_v18  ;;  %677 = vmatmul.mubr.f32.gmra.mrb[24].mxu1 %v308_v19 }
  0x9a   :  { %538 = vmatprep.mubr.f32.mxu0 %v263_v20  ;;  %682 = vmatprep.mubr.f32.mxu1 %v311_v21 }
  0x9d   :  { %539 = vmatmul.mubr.f32.gmra.mrb[26].mxu0 %v262_v22  ;;  %683 = vmatmul.mubr.f32.gmra.mrb[26].mxu1 %v310_v23 }
  0x9e   :  { %544 = vmatprep.mubr.f32.mxu0 %v265_v24  ;;  %688 = vmatprep.mubr.f32.mxu1 %v313_v25 }
  0xa1   :  { %545 = vmatmul.mubr.f32.gmra.mrb[28].mxu0 %v264_v26  ;;  %689 = vmatmul.mubr.f32.gmra.mrb[28].mxu1 %v312_v27 }
  0xa2   :  { %550 = vmatprep.mubr.f32.mxu0 %v267_v28  ;;  %694 = vmatprep.mubr.f32.mxu1 %v315_v29 }
  0xa5   :  { %551 = vmatmul.mubr.f32.gmra.mrb[30].mxu0 %v266_v30  ;;  %695 = vmatmul.mubr.f32.gmra.mrb[30].mxu1 %v314_v31 }
  0xa6   :  { %556 = vmatprep.mubr.f32.mxu0 %v269_v32  ;;  %700 = vmatprep.mubr.f32.mxu1 %v317_v33 }
  0xa9   :  { %557 = vmatmul.mubr.f32.gmra.mrb[32].mxu0 %v268_v34  ;;  %701 = vmatmul.mubr.f32.gmra.mrb[32].mxu1 %v316_v35 }
  0xaa   :  { %562 = vmatprep.mubr.f32.mxu0 %v271_v36  ;;  %706 = vmatprep.mubr.f32.mxu1 %v319_v37 }
  0xad   :  { %563 = vmatmul.mubr.f32.gmra.mrb[34].mxu0 %v270_v38  ;;  %707 = vmatmul.mubr.f32.gmra.mrb[34].mxu1 %v318_v39 }
  0xae   :  { %568 = vmatprep.mubr.f32.mxu0 %v273_v40  ;;  %712 = vmatprep.mubr.f32.mxu1 %v321_v41 }
  0xb1   :  { %569 = vmatmul.mubr.f32.gmra.mrb[36].mxu0 %v272_v42  ;;  %713 = vmatmul.mubr.f32.gmra.mrb[36].mxu1 %v320_v43 }
  0xb2   :  { %574 = vmatprep.mubr.f32.mxu0 %v275_v44  ;;  %718 = vmatprep.mubr.f32.mxu1 %v323_v45 }
  0xb5   :  { %575 = vmatmul.mubr.f32.gmra.mrb[38].mxu0 %v274_v46  ;;  %719 = vmatmul.mubr.f32.gmra.mrb[38].mxu1 %v322_v47 }
  0xb6   :  { %580 = vmatprep.mubr.f32.mxu0 %v277_v48  ;;  %724 = vmatprep.mubr.f32.mxu1 %v325_v49 }
  0xb9   :  { %581 = vmatmul.mubr.f32.gmra.mrb[40].mxu0 %v276_v50  ;;  %725 = vmatmul.mubr.f32.gmra.mrb[40].mxu1 %v324_v51 }
  0xba   :  { %586 = vmatprep.mubr.f32.mxu0 %v279_v52  ;;  %730 = vmatprep.mubr.f32.mxu1 %v327_v53 }
  0xbd   :  { %587 = vmatmul.mubr.f32.gmra.mrb[42].mxu0 %v278_v54  ;;  %731 = vmatmul.mubr.f32.gmra.mrb[42].mxu1 %v326_v55 }
  0xbe   :  { %592 = vmatprep.mubr.f32.mxu0 %v281_v56  ;;  %736 = vmatprep.mubr.f32.mxu1 %v329_v57 }
  0xc1   :  { %593 = vmatmul.mubr.f32.gmra.mrb[44].mxu0 %v280_v58  ;;  %737 = vmatmul.mubr.f32.gmra.mrb[44].mxu1 %v328_v59 }
  0xc2   :  { %598 = vmatprep.mubr.f32.mxu0 %v283_v60  ;;  %742 = vmatprep.mubr.f32.mxu1 %v331_v61 }
  0xc5   :  { %599 = vmatmul.mubr.f32.gmra.mrb[46].mxu0 %v282_v62  ;;  %743 = vmatmul.mubr.f32.gmra.mrb[46].mxu1 %v330_v63 }
 0x13c   :  { %v462_v0 = vpop.f32.mrb[0].mxu0  ;;  %v1567_v1 = vpop.f32.mrb[0].mxu1 }
 0x13d   :  { %1040 = vxpose.xlu0.b32.start [1/16] %v462_v0, 128  ;;  %v464_v2 = vpop.f32.mrb[1].mxu0  ;;  %v1569_v3 = vpop.f32.mrb[1].mxu1 }
 0x13e   :  { %1072 = vxpose.xlu1.b32.start [1/16] %v464_v2, 128 }
 0x140   :  { %v468_v4 = vpop.f32.mrb[2].mxu0  ;;  %v1571_v5 = vpop.f32.mrb[2].mxu1 }
 0x141   :  { %1041 = vxpose.xlu0.b32.cont [2/16] %v468_v4, 128  ;;  %v470_v6 = vpop.f32.mrb[3].mxu0  ;;  %v1573_v7 = vpop.f32.mrb[3].mxu1 }
 0x142   :  { %1073 = vxpose.xlu1.b32.cont [2/16] %v470_v6, 128 }
 0x144   :  { %v474_v8 = vpop.f32.mrb[4].mxu0  ;;  %v1575_v9 = vpop.f32.mrb[4].mxu1 }
 0x145   :  { %1042 = vxpose.xlu0.b32.cont [3/16] %v474_v8, 128  ;;  %v476_v10 = vpop.f32.mrb[5].mxu0  ;;  %v1577_v11 = vpop.f32.mrb[5].mxu1 }
 0x146   :  { %1074 = vxpose.xlu1.b32.cont [3/16] %v476_v10, 128 }
 0x148   :  { %v480_v12 = vpop.f32.mrb[6].mxu0  ;;  %v1579_v13 = vpop.f32.mrb[6].mxu1 }
 0x149   :  { %1043 = vxpose.xlu0.b32.cont [4/16] %v480_v12, 128  ;;  %v482_v14 = vpop.f32.mrb[7].mxu0  ;;  %v1581_v15 = vpop.f32.mrb[7].mxu1 }
 0x14a   :  { %1075 = vxpose.xlu1.b32.cont [4/16] %v482_v14, 128 }
 0x14c   :  { %v486_v16 = vpop.f32.mrb[8].mxu0  ;;  %v1583_v17 = vpop.f32.mrb[8].mxu1 }
 0x14d   :  { %1044 = vxpose.xlu0.b32.cont [5/16] %v486_v16, 128  ;;  %v488_v18 = vpop.f32.mrb[9].mxu0  ;;  %v1585_v19 = vpop.f32.mrb[9].mxu1 }
 0x14e   :  { %1076 = vxpose.xlu1.b32.cont [5/16] %v488_v18, 128 }
 0x150   :  { %v492_v20 = vpop.f32.mrb[10].mxu0  ;;  %v1587_v21 = vpop.f32.mrb[10].mxu1 }
 0x151   :  { %1045 = vxpose.xlu0.b32.cont [6/16] %v492_v20, 128  ;;  %v494_v22 = vpop.f32.mrb[11].mxu0  ;;  %v1589_v23 = vpop.f32.mrb[11].mxu1 }
 0x152   :  { %1077 = vxpose.xlu1.b32.cont [6/16] %v494_v22, 128 }
 0x154   :  { %v498_v24 = vpop.f32.mrb[12].mxu0  ;;  %v1591_v25 = vpop.f32.mrb[12].mxu1 }
 0x155   :  { %1046 = vxpose.xlu0.b32.cont [7/16] %v498_v24, 128  ;;  %v500_v26 = vpop.f32.mrb[13].mxu0  ;;  %v1593_v27 = vpop.f32.mrb[13].mxu1 }
 0x156   :  { %1078 = vxpose.xlu1.b32.cont [7/16] %v500_v26, 128 }
 0x158   :  { %v504_v28 = vpop.f32.mrb[14].mxu0  ;;  %v1595_v29 = vpop.f32.mrb[14].mxu1 }
 0x159   :  { %1047 = vxpose.xlu0.b32.cont [8/16] %v504_v28, 128  ;;  %v506_v30 = vpop.f32.mrb[15].mxu0  ;;  %v1597_v31 = vpop.f32.mrb[15].mxu1 }
 0x15a   :  { %1079 = vxpose.xlu1.b32.cont [8/16] %v506_v30, 128 }
 0x15c   :  { %v510_v32 = vpop.f32.mrb[16].mxu0  ;;  %v1599_v33 = vpop.f32.mrb[16].mxu1 }
 0x15d   :  { %1048 = vxpose.xlu0.b32.cont [9/16] %v510_v32, 128  ;;  %v512_v34 = vpop.f32.mrb[17].mxu0  ;;  %v1601_v35 = vpop.f32.mrb[17].mxu1 }
 0x15e   :  { %1080 = vxpose.xlu1.b32.cont [9/16] %v512_v34, 128 }
 0x160   :  { %v516_v36 = vpop.f32.mrb[18].mxu0  ;;  %v1603_v37 = vpop.f32.mrb[18].mxu1 }
 0x161   :  { %1049 = vxpose.xlu0.b32.cont [10/16] %v516_v36, 128  ;;  %v518_v38 = vpop.f32.mrb[19].mxu0  ;;  %v1605_v39 = vpop.f32.mrb[19].mxu1 }
 0x162   :  { %1081 = vxpose.xlu1.b32.cont [10/16] %v518_v38, 128 }
 0x164   :  { %v522_v40 = vpop.f32.mrb[20].mxu0  ;;  %v1607_v41 = vpop.f32.mrb[20].mxu1 }
 0x165   :  { %1050 = vxpose.xlu0.b32.cont [11/16] %v522_v40, 128  ;;  %v524_v42 = vpop.f32.mrb[21].mxu0  ;;  %v1609_v43 = vpop.f32.mrb[21].mxu1 }
 0x166   :  { %1082 = vxpose.xlu1.b32.cont [11/16] %v524_v42, 128 }
 0x168   :  { %v528_v44 = vpop.f32.mrb[22].mxu0  ;;  %v1611_v45 = vpop.f32.mrb[22].mxu1 }
 0x169   :  { %1051 = vxpose.xlu0.b32.cont [12/16] %v528_v44, 128  ;;  %v530_v46 = vpop.f32.mrb[23].mxu0  ;;  %v1613_v47 = vpop.f32.mrb[23].mxu1 }
 0x16a   :  { %1083 = vxpose.xlu1.b32.cont [12/16] %v530_v46, 128 }
 0x16c   :  { %v534_v48 = vpop.f32.mrb[24].mxu0  ;;  %v1615_v49 = vpop.f32.mrb[24].mxu1 }
 0x16d   :  { %1052 = vxpose.xlu0.b32.cont [13/16] %v534_v48, 128  ;;  %v536_v50 = vpop.f32.mrb[25].mxu0  ;;  %v1617_v51 = vpop.f32.mrb[25].mxu1 }
 0x16e   :  { %1084 = vxpose.xlu1.b32.cont [13/16] %v536_v50, 128 }
 0x170   :  { %v540_v52 = vpop.f32.mrb[26].mxu0  ;;  %v1619_v53 = vpop.f32.mrb[26].mxu1 }
 0x171   :  { %1053 = vxpose.xlu0.b32.cont [14/16] %v540_v52, 128  ;;  %v542_v54 = vpop.f32.mrb[27].mxu0  ;;  %v1621_v55 = vpop.f32.mrb[27].mxu1 }
 0x172   :  { %1085 = vxpose.xlu1.b32.cont [14/16] %v542_v54, 128 }
 0x174   :  { %v546_v56 = vpop.f32.mrb[28].mxu0  ;;  %v1623_v57 = vpop.f32.mrb[28].mxu1 }
 0x175   :  { %1054 = vxpose.xlu0.b32.cont [15/16] %v546_v56, 128  ;;  %v548_v58 = vpop.f32.mrb[29].mxu0  ;;  %v1625_v59 = vpop.f32.mrb[29].mxu1 }
 0x176   :  { %1086 = vxpose.xlu1.b32.cont [15/16] %v548_v58, 128 }
 0x178   :  { %v552_v60 = vpop.f32.mrb[30].mxu0  ;;  %v1627_v61 = vpop.f32.mrb[30].mxu1 }
 0x179   :  { %1055 = vxpose.xlu0.b32.end [16/16] %v552_v60, 128  ;;  %v554_v62 = vpop.f32.mrb[31].mxu0  ;;  %v1629_v63 = vpop.f32.mrb[31].mxu1 }
 0x17a   :  { %1087 = vxpose.xlu1.b32.end [16/16] %v554_v62, 128 }
 0x17c   :  { %v558_v0 = vpop.f32.mrb[32].mxu0  ;;  %v1631_v2 = vpop.f32.mrb[32].mxu1 }
 0x17d   :  { %1104 = vxpose.xlu0.b32.start [1/16] %v558_v0, 128  ;;  %v560_v4 = vpop.f32.mrb[33].mxu0  ;;  %v1633_v6 = vpop.f32.mrb[33].mxu1 }
 0x17e   :  { %1136 = vxpose.xlu1.b32.start [1/16] %v560_v4, 128 }
 0x180   :  { %v564_v8 = vpop.f32.mrb[34].mxu0  ;;  %v1635_v10 = vpop.f32.mrb[34].mxu1 }
 0x181   :  { %1105 = vxpose.xlu0.b32.cont [2/16] %v564_v8, 128  ;;  %v566_v12 = vpop.f32.mrb[35].mxu0  ;;  %v1637_v14 = vpop.f32.mrb[35].mxu1 }
 0x182   :  { %1137 = vxpose.xlu1.b32.cont [2/16] %v566_v12, 128 }
 0x184   :  { %v570_v16 = vpop.f32.mrb[36].mxu0  ;;  %v1639_v18 = vpop.f32.mrb[36].mxu1 }
 0x185   :  { %1106 = vxpose.xlu0.b32.cont [3/16] %v570_v16, 128  ;;  %v572_v20 = vpop.f32.mrb[37].mxu0  ;;  %v1641_v22 = vpop.f32.mrb[37].mxu1 }
 0x186   :  { %1138 = vxpose.xlu1.b32.cont [3/16] %v572_v20, 128 }
 0x188   :  { %v576_v24 = vpop.f32.mrb[38].mxu0  ;;  %v1643_v26 = vpop.f32.mrb[38].mxu1 }
 0x189   :  { %1107 = vxpose.xlu0.b32.cont [4/16] %v576_v24, 128  ;;  %v578_v28 = vpop.f32.mrb[39].mxu0  ;;  %v1645_v30 = vpop.f32.mrb[39].mxu1 }
 0x18a   :  { %1139 = vxpose.xlu1.b32.cont [4/16] %v578_v28, 128 }
 0x18c   :  { %v582_v32 = vpop.f32.mrb[40].mxu0  ;;  %v1647_v34 = vpop.f32.mrb[40].mxu1 }
 0x18d   :  { %1108 = vxpose.xlu0.b32.cont [5/16] %v582_v32, 128  ;;  %v584_v36 = vpop.f32.mrb[41].mxu0  ;;  %v1649_v38 = vpop.f32.mrb[41].mxu1 }
 0x18e   :  { %1140 = vxpose.xlu1.b32.cont [5/16] %v584_v36, 128 }
 0x190   :  { %v588_v40 = vpop.f32.mrb[42].mxu0  ;;  %v1651_v42 = vpop.f32.mrb[42].mxu1 }
 0x191   :  { %1109 = vxpose.xlu0.b32.cont [6/16] %v588_v40, 128  ;;  %v590_v44 = vpop.f32.mrb[43].mxu0  ;;  %v1653_v46 = vpop.f32.mrb[43].mxu1 }
 0x192   :  { %1141 = vxpose.xlu1.b32.cont [6/16] %v590_v44, 128 }
 0x194   :  { %v594_v48 = vpop.f32.mrb[44].mxu0  ;;  %v1655_v50 = vpop.f32.mrb[44].mxu1 }
 0x195   :  { %1110 = vxpose.xlu0.b32.cont [7/16] %v594_v48, 128  ;;  %v596_v52 = vpop.f32.mrb[45].mxu0  ;;  %v1657_v54 = vpop.f32.mrb[45].mxu1 }
 0x196   :  { %1142 = vxpose.xlu1.b32.cont [7/16] %v596_v52, 128 }
 0x198   :  { %v600_v56 = vpop.f32.mrb[46].mxu0  ;;  %v1659_v58 = vpop.f32.mrb[46].mxu1 }
 0x199   :  { %1111 = vxpose.xlu0.b32.cont [8/16] %v600_v56, 128  ;;  %v602_v60 = vpop.f32.mrb[47].mxu0  ;;  %v1661_v62 = vpop.f32.mrb[47].mxu1 }
 0x19a   :  { %1143 = vxpose.xlu1.b32.cont [8/16] %v602_v60, 128 }
 0x19d   :  { %1112 = vxpose.xlu0.b32.cont [9/16] %v1567_v1, 128 }
 0x19e   :  { %1144 = vxpose.xlu1.b32.cont [9/16] %v1569_v3, 128 }
 0x1a1   :  { %1113 = vxpose.xlu0.b32.cont [10/16] %v1571_v5, 128 }
 0x1a2   :  { %1145 = vxpose.xlu1.b32.cont [10/16] %v1573_v7, 128 }
 0x1a5   :  { %1114 = vxpose.xlu0.b32.cont [11/16] %v1575_v9, 128 }
 0x1a6   :  { %1146 = vxpose.xlu1.b32.cont [11/16] %v1577_v11, 128 }
 0x1a9   :  { %1115 = vxpose.xlu0.b32.cont [12/16] %v1579_v13, 128 }
 0x1aa   :  { %1147 = vxpose.xlu1.b32.cont [12/16] %v1581_v15, 128 }
 0x1ad   :  { %1116 = vxpose.xlu0.b32.cont [13/16] %v1583_v17, 128 }
 0x1ae   :  { %1148 = vxpose.xlu1.b32.cont [13/16] %v1585_v19, 128 }
 0x1b1   :  { %1117 = vxpose.xlu0.b32.cont [14/16] %v1587_v21, 128 }
 0x1b2   :  { %1149 = vxpose.xlu1.b32.cont [14/16] %v1589_v23, 128 }
 0x1b5   :  { %1118 = vxpose.xlu0.b32.cont [15/16] %v1591_v25, 128 }
 0x1b6   :  { %1150 = vxpose.xlu1.b32.cont [15/16] %v1593_v27, 128 }
 0x1b9   :  { %1119 = vxpose.xlu0.b32.end [16/16] %v1595_v29, 128 }
 0x1ba   :  { %1151 = vxpose.xlu1.b32.end [16/16] %v1597_v31, 128 }
 0x1bd   :  { %1168 = vxpose.xlu0.b32.start [1/16] %v1599_v33, 128  ;;  %v1056_v1 = vpop.trf.xlu0 }
 0x1be   :  { %1232 = vst [vmem:[#allocation8] sm:$0xff] %v1056_v1  ;;  %v1088_v3 = vpop.trf.xlu1  ;;  %1200 = vxpose.xlu1.b32.start [1/16] %v1601_v35, 128 }
 0x1bf   :  { %1280 = vst [vmem:[#allocation8 + $0x180] sm:$0xff] %v1088_v3 }
 0x1c1   :  { %1169 = vxpose.xlu0.b32.cont [2/16] %v1603_v37, 128  ;;  %v1057_v5 = vpop.trf.xlu0 }
 0x1c2   :  { %1235 = vst [vmem:[#allocation8 + $0x18] sm:$0xff] %v1057_v5  ;;  %v1089_v7 = vpop.trf.xlu1  ;;  %1201 = vxpose.xlu1.b32.cont [2/16] %v1605_v39, 128 }
 0x1c3   :  { %1283 = vst [vmem:[#allocation8 + $0x198] sm:$0xff] %v1089_v7 }
 0x1c5   :  { %1170 = vxpose.xlu0.b32.cont [3/16] %v1607_v41, 128  ;;  %v1058_v9 = vpop.trf.xlu0 }
 0x1c6   :  { %1238 = vst [vmem:[#allocation8 + $0x30] sm:$0xff] %v1058_v9  ;;  %v1090_v11 = vpop.trf.xlu1  ;;  %1202 = vxpose.xlu1.b32.cont [3/16] %v1609_v43, 128 }
 0x1c7   :  { %1286 = vst [vmem:[#allocation8 + $0x1b0] sm:$0xff] %v1090_v11 }
 0x1c9   :  { %1171 = vxpose.xlu0.b32.cont [4/16] %v1611_v45, 128  ;;  %v1059_v13 = vpop.trf.xlu0 }
 0x1ca   :  { %1241 = vst [vmem:[#allocation8 + $0x48] sm:$0xff] %v1059_v13  ;;  %v1091_v15 = vpop.trf.xlu1  ;;  %1203 = vxpose.xlu1.b32.cont [4/16] %v1613_v47, 128 }
 0x1cb   :  { %1289 = vst [vmem:[#allocation8 + $0x1c8] sm:$0xff] %v1091_v15 }
 0x1cd   :  { %1172 = vxpose.xlu0.b32.cont [5/16] %v1615_v49, 128  ;;  %v1060_v17 = vpop.trf.xlu0 }
 0x1ce   :  { %1244 = vst [vmem:[#allocation8 + $0x60] sm:$0xff] %v1060_v17  ;;  %v1092_v19 = vpop.trf.xlu1  ;;  %1204 = vxpose.xlu1.b32.cont [5/16] %v1617_v51, 128 }
 0x1cf   :  { %1292 = vst [vmem:[#allocation8 + $0x1e0] sm:$0xff] %v1092_v19 }
 0x1d1   :  { %1173 = vxpose.xlu0.b32.cont [6/16] %v1619_v53, 128  ;;  %v1061_v21 = vpop.trf.xlu0 }
 0x1d2   :  { %1247 = vst [vmem:[#allocation8 + $0x78] sm:$0xff] %v1061_v21  ;;  %v1093_v23 = vpop.trf.xlu1  ;;  %1205 = vxpose.xlu1.b32.cont [6/16] %v1621_v55, 128 }
 0x1d3   :  { %1295 = vst [vmem:[#allocation8 + $0x1f8] sm:$0xff] %v1093_v23 }
 0x1d5   :  { %1174 = vxpose.xlu0.b32.cont [7/16] %v1623_v57, 128  ;;  %v1062_v25 = vpop.trf.xlu0 }
 0x1d6   :  { %1250 = vst [vmem:[#allocation8 + $0x90] sm:$0xff] %v1062_v25  ;;  %v1094_v27 = vpop.trf.xlu1  ;;  %1206 = vxpose.xlu1.b32.cont [7/16] %v1625_v59, 128 }
 0x1d7   :  { %1298 = vst [vmem:[#allocation8 + $0x210] sm:$0xff] %v1094_v27 }
 0x1d9   :  { %1175 = vxpose.xlu0.b32.cont [8/16] %v1627_v61, 128  ;;  %v1063_v29 = vpop.trf.xlu0 }
 0x1da   :  { %1253 = vst [vmem:[#allocation8 + $0xa8] sm:$0xff] %v1063_v29  ;;  %v1095_v31 = vpop.trf.xlu1  ;;  %1207 = vxpose.xlu1.b32.cont [8/16] %v1629_v63, 128 }
 0x1db   :  { %1301 = vst [vmem:[#allocation8 + $0x228] sm:$0xff] %v1095_v31 }
 0x1dd   :  { %1176 = vxpose.xlu0.b32.cont [9/16] %v1631_v2, 128  ;;  %v1064_v33 = vpop.trf.xlu0 }
 0x1de   :  { %1256 = vst [vmem:[#allocation8 + $0xc0] sm:$0xff] %v1064_v33  ;;  %v1096_v35 = vpop.trf.xlu1  ;;  %1208 = vxpose.xlu1.b32.cont [9/16] %v1633_v6, 128 }
 0x1df   :  { %1304 = vst [vmem:[#allocation8 + $0x240] sm:$0xff] %v1096_v35 }
 0x1e1   :  { %1177 = vxpose.xlu0.b32.cont [10/16] %v1635_v10, 128  ;;  %v1065_v37 = vpop.trf.xlu0 }
 0x1e2   :  { %1259 = vst [vmem:[#allocation8 + $0xd8] sm:$0xff] %v1065_v37  ;;  %v1097_v39 = vpop.trf.xlu1  ;;  %1209 = vxpose.xlu1.b32.cont [10/16] %v1637_v14, 128 }
 0x1e3   :  { %1307 = vst [vmem:[#allocation8 + $0x258] sm:$0xff] %v1097_v39 }
 0x1e5   :  { %1178 = vxpose.xlu0.b32.cont [11/16] %v1639_v18, 128  ;;  %v1066_v41 = vpop.trf.xlu0 }
 0x1e6   :  { %1262 = vst [vmem:[#allocation8 + $0xf0] sm:$0xff] %v1066_v41  ;;  %v1098_v43 = vpop.trf.xlu1  ;;  %1210 = vxpose.xlu1.b32.cont [11/16] %v1641_v22, 128 }
 0x1e7   :  { %1310 = vst [vmem:[#allocation8 + $0x270] sm:$0xff] %v1098_v43 }
 0x1e9   :  { %1179 = vxpose.xlu0.b32.cont [12/16] %v1643_v26, 128  ;;  %v1067_v45 = vpop.trf.xlu0 }
 0x1ea   :  { %1265 = vst [vmem:[#allocation8 + $0x108] sm:$0xff] %v1067_v45  ;;  %v1099_v47 = vpop.trf.xlu1  ;;  %1211 = vxpose.xlu1.b32.cont [12/16] %v1645_v30, 128 }
 0x1eb   :  { %1313 = vst [vmem:[#allocation8 + $0x288] sm:$0xff] %v1099_v47 }
 0x1ed   :  { %1180 = vxpose.xlu0.b32.cont [13/16] %v1647_v34, 128  ;;  %v1068_v49 = vpop.trf.xlu0 }
 0x1ee   :  { %1268 = vst [vmem:[#allocation8 + $0x120] sm:$0xff] %v1068_v49  ;;  %v1100_v51 = vpop.trf.xlu1  ;;  %1212 = vxpose.xlu1.b32.cont [13/16] %v1649_v38, 128 }
 0x1ef   :  { %1316 = vst [vmem:[#allocation8 + $0x2a0] sm:$0xff] %v1100_v51 }
 0x1f1   :  { %1181 = vxpose.xlu0.b32.cont [14/16] %v1651_v42, 128  ;;  %v1069_v53 = vpop.trf.xlu0 }
 0x1f2   :  { %1271 = vst [vmem:[#allocation8 + $0x138] sm:$0xff] %v1069_v53  ;;  %v1101_v55 = vpop.trf.xlu1  ;;  %1213 = vxpose.xlu1.b32.cont [14/16] %v1653_v46, 128 }
 0x1f3   :  { %1319 = vst [vmem:[#allocation8 + $0x2b8] sm:$0xff] %v1101_v55 }
 0x1f5   :  { %1182 = vxpose.xlu0.b32.cont [15/16] %v1655_v50, 128  ;;  %v1070_v57 = vpop.trf.xlu0 }
 0x1f6   :  { %1274 = vst [vmem:[#allocation8 + $0x150] sm:$0xff] %v1070_v57  ;;  %v1102_v59 = vpop.trf.xlu1  ;;  %1214 = vxpose.xlu1.b32.cont [15/16] %v1657_v54, 128 }
 0x1f7   :  { %1322 = vst [vmem:[#allocation8 + $0x2d0] sm:$0xff] %v1102_v59 }
 0x1f9   :  { %1183 = vxpose.xlu0.b32.end [16/16] %v1659_v58, 128  ;;  %v1071_v61 = vpop.trf.xlu0 }
 0x1fa   :  { %1277 = vst [vmem:[#allocation8 + $0x168] sm:$0xff] %v1071_v61  ;;  %v1103_v63 = vpop.trf.xlu1  ;;  %1215 = vxpose.xlu1.b32.end [16/16] %v1661_v62, 128 }
 0x1fb   :  { %1325 = vst [vmem:[#allocation8 + $0x2e8] sm:$0xff] %v1103_v63 }
 0x1fd   :  { %v1120_v0 = vpop.trf.xlu0 }
 0x1fe   :  { %1233 = vst [vmem:[#allocation8 + $0x8] sm:$0xff] %v1120_v0  ;;  %v1152_v2 = vpop.trf.xlu1 }
 0x1ff   :  { %1281 = vst [vmem:[#allocation8 + $0x188] sm:$0xff] %v1152_v2 }
 0x201   :  { %v1121_v4 = vpop.trf.xlu0 }
 0x202   :  { %1236 = vst [vmem:[#allocation8 + $0x20] sm:$0xff] %v1121_v4  ;;  %v1153_v6 = vpop.trf.xlu1 }
 0x203   :  { %1284 = vst [vmem:[#allocation8 + $0x1a0] sm:$0xff] %v1153_v6 }
 0x205   :  { %v1122_v8 = vpop.trf.xlu0 }
 0x206   :  { %1239 = vst [vmem:[#allocation8 + $0x38] sm:$0xff] %v1122_v8  ;;  %v1154_v10 = vpop.trf.xlu1 }
 0x207   :  { %1287 = vst [vmem:[#allocation8 + $0x1b8] sm:$0xff] %v1154_v10 }
 0x209   :  { %v1123_v12 = vpop.trf.xlu0 }
 0x20a   :  { %1242 = vst [vmem:[#allocation8 + $0x50] sm:$0xff] %v1123_v12  ;;  %v1155_v14 = vpop.trf.xlu1 }
 0x20b   :  { %1290 = vst [vmem:[#allocation8 + $0x1d0] sm:$0xff] %v1155_v14 }
 0x20d   :  { %v1124_v16 = vpop.trf.xlu0 }
 0x20e   :  { %1245 = vst [vmem:[#allocation8 + $0x68] sm:$0xff] %v1124_v16  ;;  %v1156_v18 = vpop.trf.xlu1 }
 0x20f   :  { %1293 = vst [vmem:[#allocation8 + $0x1e8] sm:$0xff] %v1156_v18 }
 0x211   :  { %v1125_v20 = vpop.trf.xlu0 }
 0x212   :  { %1248 = vst [vmem:[#allocation8 + $0x80] sm:$0xff] %v1125_v20  ;;  %v1157_v22 = vpop.trf.xlu1 }
 0x213   :  { %1296 = vst [vmem:[#allocation8 + $0x200] sm:$0xff] %v1157_v22 }
 0x215   :  { %v1126_v24 = vpop.trf.xlu0 }
 0x216   :  { %1251 = vst [vmem:[#allocation8 + $0x98] sm:$0xff] %v1126_v24  ;;  %v1158_v26 = vpop.trf.xlu1 }
 0x217   :  { %1299 = vst [vmem:[#allocation8 + $0x218] sm:$0xff] %v1158_v26 }
 0x219   :  { %v1127_v28 = vpop.trf.xlu0 }
 0x21a   :  { %1254 = vst [vmem:[#allocation8 + $0xb0] sm:$0xff] %v1127_v28  ;;  %v1159_v30 = vpop.trf.xlu1 }
 0x21b   :  { %1302 = vst [vmem:[#allocation8 + $0x230] sm:$0xff] %v1159_v30 }
 0x21d   :  { %v1128_v32 = vpop.trf.xlu0 }
 0x21e   :  { %1257 = vst [vmem:[#allocation8 + $0xc8] sm:$0xff] %v1128_v32  ;;  %v1160_v34 = vpop.trf.xlu1 }
 0x21f   :  { %1305 = vst [vmem:[#allocation8 + $0x248] sm:$0xff] %v1160_v34 }
 0x221   :  { %v1129_v36 = vpop.trf.xlu0 }
 0x222   :  { %1260 = vst [vmem:[#allocation8 + $0xe0] sm:$0xff] %v1129_v36  ;;  %v1161_v38 = vpop.trf.xlu1 }
 0x223   :  { %1308 = vst [vmem:[#allocation8 + $0x260] sm:$0xff] %v1161_v38 }
 0x225   :  { %v1130_v40 = vpop.trf.xlu0 }
 0x226   :  { %1263 = vst [vmem:[#allocation8 + $0xf8] sm:$0xff] %v1130_v40  ;;  %v1162_v42 = vpop.trf.xlu1 }
 0x227   :  { %1311 = vst [vmem:[#allocation8 + $0x278] sm:$0xff] %v1162_v42 }
 0x229   :  { %v1131_v44 = vpop.trf.xlu0 }
 0x22a   :  { %1266 = vst [vmem:[#allocation8 + $0x110] sm:$0xff] %v1131_v44  ;;  %v1163_v46 = vpop.trf.xlu1 }
 0x22b   :  { %1314 = vst [vmem:[#allocation8 + $0x290] sm:$0xff] %v1163_v46 }
 0x22d   :  { %v1132_v48 = vpop.trf.xlu0 }
 0x22e   :  { %1269 = vst [vmem:[#allocation8 + $0x128] sm:$0xff] %v1132_v48  ;;  %v1164_v50 = vpop.trf.xlu1 }
 0x22f   :  { %1317 = vst [vmem:[#allocation8 + $0x2a8] sm:$0xff] %v1164_v50 }
 0x231   :  { %v1133_v52 = vpop.trf.xlu0 }
 0x232   :  { %1272 = vst [vmem:[#allocation8 + $0x140] sm:$0xff] %v1133_v52  ;;  %v1165_v54 = vpop.trf.xlu1 }
 0x233   :  { %1320 = vst [vmem:[#allocation8 + $0x2c0] sm:$0xff] %v1165_v54 }
 0x235   :  { %v1134_v56 = vpop.trf.xlu0 }
 0x236   :  { %1275 = vst [vmem:[#allocation8 + $0x158] sm:$0xff] %v1134_v56  ;;  %v1166_v58 = vpop.trf.xlu1 }
 0x237   :  { %1323 = vst [vmem:[#allocation8 + $0x2d8] sm:$0xff] %v1166_v58 }
 0x239   :  { %v1135_v60 = vpop.trf.xlu0 }
 0x23a   :  { %1278 = vst [vmem:[#allocation8 + $0x170] sm:$0xff] %v1135_v60  ;;  %v1167_v62 = vpop.trf.xlu1 }
 0x23b   :  { %1326 = vst [vmem:[#allocation8 + $0x2f0] sm:$0xff] %v1167_v62 }
 0x23d   :  { %v1184_v1 = vpop.trf.xlu0 }
 0x23e   :  { %1234 = vst [vmem:[#allocation8 + $0x10] sm:$0xff] %v1184_v1  ;;  %v1216_v3 = vpop.trf.xlu1 }
 0x23f   :  { %1282 = vst [vmem:[#allocation8 + $0x190] sm:$0xff] %v1216_v3 }
 0x241   :  { %v1185_v5 = vpop.trf.xlu0 }
 0x242   :  { %1237 = vst [vmem:[#allocation8 + $0x28] sm:$0xff] %v1185_v5  ;;  %v1217_v7 = vpop.trf.xlu1 }
 0x243   :  { %1285 = vst [vmem:[#allocation8 + $0x1a8] sm:$0xff] %v1217_v7 }
 0x245   :  { %v1186_v9 = vpop.trf.xlu0 }
 0x246   :  { %1240 = vst [vmem:[#allocation8 + $0x40] sm:$0xff] %v1186_v9  ;;  %v1218_v11 = vpop.trf.xlu1 }
 0x247   :  { %1288 = vst [vmem:[#allocation8 + $0x1c0] sm:$0xff] %v1218_v11 }
 0x249   :  { %v1187_v13 = vpop.trf.xlu0 }
 0x24a   :  { %1243 = vst [vmem:[#allocation8 + $0x58] sm:$0xff] %v1187_v13  ;;  %v1219_v15 = vpop.trf.xlu1 }
 0x24b   :  { %1291 = vst [vmem:[#allocation8 + $0x1d8] sm:$0xff] %v1219_v15 }
 0x24d   :  { %v1188_v17 = vpop.trf.xlu0 }
 0x24e   :  { %1246 = vst [vmem:[#allocation8 + $0x70] sm:$0xff] %v1188_v17  ;;  %v1220_v19 = vpop.trf.xlu1 }
 0x24f   :  { %1294 = vst [vmem:[#allocation8 + $0x1f0] sm:$0xff] %v1220_v19 }
 0x251   :  { %v1189_v21 = vpop.trf.xlu0 }
 0x252   :  { %1249 = vst [vmem:[#allocation8 + $0x88] sm:$0xff] %v1189_v21  ;;  %v1221_v23 = vpop.trf.xlu1 }
 0x253   :  { %1297 = vst [vmem:[#allocation8 + $0x208] sm:$0xff] %v1221_v23 }
 0x255   :  { %v1190_v25 = vpop.trf.xlu0 }
 0x256   :  { %1252 = vst [vmem:[#allocation8 + $0xa0] sm:$0xff] %v1190_v25  ;;  %v1222_v27 = vpop.trf.xlu1 }
 0x257   :  { %1300 = vst [vmem:[#allocation8 + $0x220] sm:$0xff] %v1222_v27 }
 0x259   :  { %v1191_v29 = vpop.trf.xlu0 }
 0x25a   :  { %1255 = vst [vmem:[#allocation8 + $0xb8] sm:$0xff] %v1191_v29  ;;  %v1223_v31 = vpop.trf.xlu1 }
 0x25b   :  { %1303 = vst [vmem:[#allocation8 + $0x238] sm:$0xff] %v1223_v31 }
 0x25d   :  { %v1192_v33 = vpop.trf.xlu0 }
 0x25e   :  { %1258 = vst [vmem:[#allocation8 + $0xd0] sm:$0xff] %v1192_v33  ;;  %v1224_v35 = vpop.trf.xlu1 }
 0x25f   :  { %1306 = vst [vmem:[#allocation8 + $0x250] sm:$0xff] %v1224_v35 }
 0x261   :  { %v1193_v37 = vpop.trf.xlu0 }
 0x262   :  { %1261 = vst [vmem:[#allocation8 + $0xe8] sm:$0xff] %v1193_v37  ;;  %v1225_v39 = vpop.trf.xlu1 }
 0x263   :  { %1309 = vst [vmem:[#allocation8 + $0x268] sm:$0xff] %v1225_v39 }
 0x265   :  { %v1194_v41 = vpop.trf.xlu0 }
 0x266   :  { %1264 = vst [vmem:[#allocation8 + $0x100] sm:$0xff] %v1194_v41  ;;  %v1226_v43 = vpop.trf.xlu1 }
 0x267   :  { %1312 = vst [vmem:[#allocation8 + $0x280] sm:$0xff] %v1226_v43 }
 0x269   :  { %v1195_v45 = vpop.trf.xlu0 }
 0x26a   :  { %1267 = vst [vmem:[#allocation8 + $0x118] sm:$0xff] %v1195_v45  ;;  %v1227_v47 = vpop.trf.xlu1 }
 0x26b   :  { %1315 = vst [vmem:[#allocation8 + $0x298] sm:$0xff] %v1227_v47 }
 0x26d   :  { %v1196_v49 = vpop.trf.xlu0 }
 0x26e   :  { %1270 = vst [vmem:[#allocation8 + $0x130] sm:$0xff] %v1196_v49  ;;  %v1228_v51 = vpop.trf.xlu1 }
 0x26f   :  { %1318 = vst [vmem:[#allocation8 + $0x2b0] sm:$0xff] %v1228_v51 }
 0x271   :  { %v1197_v53 = vpop.trf.xlu0 }
 0x272   :  { %1273 = vst [vmem:[#allocation8 + $0x148] sm:$0xff] %v1197_v53  ;;  %v1229_v55 = vpop.trf.xlu1 }
 0x273   :  { %1321 = vst [vmem:[#allocation8 + $0x2c8] sm:$0xff] %v1229_v55 }
 0x275   :  { %v1198_v57 = vpop.trf.xlu0 }
 0x276   :  { %1276 = vst [vmem:[#allocation8 + $0x160] sm:$0xff] %v1198_v57  ;;  %v1230_v59 = vpop.trf.xlu1 }
 0x277   :  { %1324 = vst [vmem:[#allocation8 + $0x2e0] sm:$0xff] %v1230_v59 }
 0x279   :  { %v1199_v61 = vpop.trf.xlu0 }
 0x27a   :  { %1279 = vst [vmem:[#allocation8 + $0x178] sm:$0xff] %v1199_v61  ;;  %v1231_v63 = vpop.trf.xlu1 }
 0x27b   :  { %1327 = vst [vmem:[#allocation8 + $0x2f8] sm:$0xff] %v1231_v63 }
 0x27c   :  { %1504 = shalt.err (!%p1501_p6)
}
 0x27d   :  { %s1505_s10 = scalar_lea.hbm %s1725_s2, 12288 }
 0x27e   :  { %p1506_p7 = scmp.ne.s32.totalorder %s1725_s2, %s1505_s10  ;;  %p1509_p8 = scmp.lt.u32.totalorder %s1505_s10, %s1725_s2 }
 0x280   :  { %p1511_p9 = pnand %p1509_p8, %p1506_p7 }
 0x282   :  { %1514 = shalt.err (!%p1511_p9)
}
 0x283   :  { %s1526_s15 = smov 384   ;;  %s1527_s16 = smov 24  }
 0x284   :  { %1339 = dma.vmem_to_hbm [thread:$0]  %s1334_s6, 12288, %s1725_s2, [#allocation5], %s1526_s15, %s1526_s15, %s1527_s16  }
 0x285   :  { %1519 = dma.done.wait [#allocation5], 12288  }
 0x286   :  { %1520 = vsyncadd [#allocation5], 4294955008 }
 0x287   :  { %1343 = vsyncpa [#allocation4], 1 }
 0x288   :  { %1344 = vsyncpa [#allocation7], 1 }
 0x289   :  { %1345 = vsyncpa [#allocation5], 1 }

</bundles_post_ra>
